<compile_context>
chip_gen: v7x
topology: tpu7x:2x2x1
jax: 0.10.0
libtpu: 0.0.40
codegen_flags: <defaults>
</compile_context>

<pallas_src>
import functools

import jax
import jax.numpy as jnp
from jax.experimental import pallas as pl
from jax.experimental.pallas import tpu as pltpu


def _label_smoothing_kernel(x_ref, tgt_ref, out_ref, *, smoothing: float,
                            n_total: int):
    i = pl.program_id(0)

    x = x_ref[...].astype(jnp.float32)         # (TN, C)
    tgt = tgt_ref[...]                         # (TN, 1) int32
    tn, c = x.shape

    # Numerically stable log-softmax pieces (m cancels out of the fused form).
    m = jnp.max(x, axis=-1, keepdims=True)                             # (TN,1)
    shifted = x - m                                                    # (TN,C)
    lse = jnp.log(jnp.sum(jnp.exp(shifted), axis=-1, keepdims=True))   # (TN,1)

    # Fused weighted reduction:
    #   loss_row = confidence*nll + smoothing*smooth
    #            = -sum_c(logprobs * w),  w = confidence*onehot + smoothing/C
    #            = lse - sum_c(shifted * w)          (since sum_c w == 1)
    confidence = 1.0 - smoothing
    uniform = smoothing / c
    col = jax.lax.broadcasted_iota(jnp.int32, (tn, c), 1)
    w = jnp.where(col == tgt, confidence + uniform, uniform)           # (TN,C)
    loss = lse - jnp.sum(shifted * w, axis=-1, keepdims=True)          # (TN,1)

    # Ragged last tile: rows >= n_total are unspecified OOB reads (no pad in
    # the wrapper); exclude them from the mean.  select picks 0.0 value-wise,
    # so NaN/Inf in those rows cannot leak into the sum.
    row = i * tn + jax.lax.broadcasted_iota(jnp.int32, (tn, 1), 0)
    loss = jnp.where(row < n_total, loss, 0.0)

    # Per-tile contribution to the global mean, broadcast into a lane-dense
    # (1, 8, 128) output tile (unmasked store, block owned by this grid step).
    partial = jnp.sum(loss) * (1.0 / n_total)
    out_ref[...] = jnp.broadcast_to(partial, out_ref.shape)


def _round_up(v: int, m: int) -> int:
    return -(-v // m) * m


def _round_down(v: int, m: int) -> int:
    return (v // m) * m


def _cdiv(a: int, b: int) -> int:
    return -(-a // b)


def _vmem_capacity_bytes() -> int:
    try:
        info = pltpu.get_tpu_info()
        cap = getattr(info, "vmem_capacity_bytes", None)
        if cap:
            return int(cap)
    except Exception:
        pass
    return 64 * 1024 * 1024  # conservative (v7x-sized) fallback


def label_smoothing_loss(x, target, smoothing: float = 0.1, block_rows=None):
    """x: (N, C) float logits; target: (N,) int labels. Returns scalar loss."""
    n, c = x.shape
    itemsize = jnp.dtype(x.dtype).itemsize
    assert itemsize in (2, 4), "expects f32/bf16 logits"
    align = 16 if itemsize == 2 else 8          # sublane packing (bf16 vs f32)

    vmem_cap = _vmem_capacity_bytes()
    small_vmem = vmem_cap <= 64 * 1024 * 1024   # v7x: 64 MiB / TensorCore
    # Size the x block by its *f32* working set so the in-kernel f32
    # temporaries (upcast / shifted / exp / weights) stay bounded everywhere.
    target_block_bytes = (4 if small_vmem else 8) * 1024 * 1024

    n_ceil = _round_up(n, align)
    if block_rows is None:
        auto_rows = max(align, target_block_bytes // (c * 4))
        tn = max(align, _round_down(min(auto_rows, n_ceil), align))
        # Feed both v7x TensorCores and keep >=2 steps/core of double
        # buffering: if one huge block leaves <8 grid steps, shrink it.
        min_tiles = 8
        if _cdiv(n, tn) < min_tiles:
            tn_alt = _round_up(max(1, _cdiv(n, min_tiles)), align)
            tn = max(align, min(tn, tn_alt))
    else:
        tn = max(align, _round_down(min(int(block_rows), n_ceil), align))

    num_tiles = _cdiv(n, tn)

    # No padding of x (or target): the last block may read past the logical
    # end; the in-kernel row mask removes those rows from the mean and garbage
    # targets only feed an integer compare.
    tgt2d = target.astype(jnp.int32).reshape(n, 1)

    kernel = functools.partial(
        _label_smoothing_kernel, smoothing=float(smoothing), n_total=n)

    # Generation-aware scoped-VMEM request: double-buffered x input plus a
    # conservative count of whole-block f32 temporaries, capped with headroom
    # below the physical capacity (48 MiB on v7x, up to 96 MiB on v5e/v6e).
    block_bytes = tn * c * itemsize
    f32_block_bytes = tn * c * 4
    vmem_cap_limit = min(vmem_cap * 3 // 4, 96 * 1024 * 1024)
    vmem_needed = 2 * block_bytes + 5 * f32_block_bytes + 4 * tn * 4 + (1 << 20)
    vmem_limit = int(min(vmem_cap_limit, max(32 * 1024 * 1024, vmem_needed)))

    cost = pl.CostEstimate(
        flops=6 * n * c,
        transcendentals=n * c,
        bytes_accessed=n * c * itemsize + n * 4 + num_tiles * 8 * 128 * 4,
    )

    partials = pl.pallas_call(
        kernel,
        out_shape=jax.ShapeDtypeStruct((num_tiles, 8, 128), jnp.float32),
        grid_spec=pltpu.PrefetchScalarGridSpec(
            num_scalar_prefetch=0,
            grid=(num_tiles,),
            in_specs=[
                # TODO(synk): sweep pipeline_mode=pl.Buffered(3) on v7x if a
                # trace shows exposed DMA waits.
                pl.BlockSpec((tn, c), lambda i: (i, 0)),
                pl.BlockSpec((tn, 1), lambda i: (i, 0)),
            ],
            out_specs=pl.BlockSpec((1, 8, 128), lambda i: (i, 0, 0)),
        ),
        compiler_params=pltpu.CompilerParams(
            dimension_semantics=("parallel",),
            vmem_limit_bytes=vmem_limit,
        ),
        cost_estimate=cost,
    )(x, tgt2d)

    # Tiny final reduction over per-tile partials (each already divided by N).
    return jnp.sum(partials[:, 0, 0])


def _reference_loss(x, target, smoothing):
    # Pure-JAX reference mirroring the PyTorch module.
    logprobs = jax.nn.log_softmax(x.astype(jnp.float32), axis=-1)
    nll = -jnp.take_along_axis(logprobs, target[:, None], axis=-1)[:, 0]
    smooth = -jnp.mean(logprobs, axis=-1)
    loss = (1.0 - smoothing) * nll + smoothing * smooth
    return jnp.mean(loss)


if __name__ == "__main__":
    key = jax.random.PRNGKey(0)
    kx, kt = jax.random.split(key)

    N, C = 20, 32            # small batch of logits over C classes
    smoothing = 0.1

    x = jax.random.normal(kx, (N, C), dtype=jnp.float32)
    target = jax.random.randint(kt, (N,), 0, C, dtype=jnp.int32)

    ref = jax.block_until_ready(_reference_loss(x, target, smoothing))

    # Explicit block_rows=8 -> 3 tiles with a ragged (unpadded) last tile:
    # exercises the OOB-read + in-kernel row-mask path.
    loss = label_smoothing_loss(x, target, smoothing=smoothing, block_rows=8)
    loss = jax.block_until_ready(loss)
    assert jnp.allclose(loss, ref, atol=1e-5, rtol=1e-5), (loss, ref)

    # Auto tile-sizing path (byte-budget + min-tiles heuristic).
    loss2 = jax.block_until_ready(
        label_smoothing_loss(x, target, smoothing=smoothing))
    assert jnp.allclose(loss2, ref, atol=1e-5, rtol=1e-5), (loss2, ref)

    print("KERNEL_OK")
</pallas_src>

<mosaic_0001>
module attributes {stable_mosaic.version = 11 : i64} {
  func.func @_label_smoothing_kernel(%arg0: i32, %arg1: memref<8x32xf32, #tpu.memory_space<vmem>>, %arg2: memref<8x1xi32, #tpu.memory_space<vmem>>, %arg3: memref<1x8x128xf32, #tpu.memory_space<vmem>>) attributes {dimension_semantics = [#tpu.dimension_semantics<parallel>], iteration_bounds = array<i64: 3>, scalar_prefetch = 0 : i64, scratch_operands = 0 : i64, tpu.core_type = #tpu.core_type<tc>, window_params = [{transform_indices = @transform_0, window_bounds = array<i64: 8, 32>}, {transform_indices = @transform_1, window_bounds = array<i64: 8, 1>}, {transform_indices = @transform_2, window_bounds = array<i64: 1, 8, 128>}]} {
    %c0 = arith.constant 0 : index
    %c0_0 = arith.constant 0 : index
    %0 = vector.load %arg1[%c0, %c0_0] : memref<8x32xf32, #tpu.memory_space<vmem>>, vector<8x32xf32>
    %c0_1 = arith.constant 0 : index
    %c0_2 = arith.constant 0 : index
    %1 = vector.load %arg2[%c0_1, %c0_2] : memref<8x1xi32, #tpu.memory_space<vmem>>, vector<8x1xi32>
    %cst = arith.constant dense<0xFF800000> : vector<8xf32>
    %2 = vector.multi_reduction <maximumf>, %0, %cst [1] : vector<8x32xf32> to vector<8xf32>
    %3 = vector.shape_cast %2 : vector<8xf32> to vector<8x1xf32>
    %4 = vector.broadcast %3 : vector<8x1xf32> to vector<8x32xf32>
    %5 = arith.subf %0, %4 : vector<8x32xf32>
    %6 = math.exp %5 : vector<8x32xf32>
    %cst_3 = arith.constant dense<0.000000e+00> : vector<8xf32>
    %7 = vector.multi_reduction <add>, %6, %cst_3 [1] : vector<8x32xf32> to vector<8xf32>
    %8 = vector.shape_cast %7 : vector<8xf32> to vector<8x1xf32>
    %9 = math.log %8 : vector<8x1xf32>
    %10 = tpu.iota {dimensions = array<i32: 1>} : vector<8x32xi32>
    %11 = vector.broadcast %1 : vector<8x1xi32> to vector<8x32xi32>
    %12 = arith.cmpi eq, %10, %11 : vector<8x32xi32>
    %cst_4 = arith.constant 0.903124988 : f32
    %cst_5 = arith.constant 3.125000e-03 : f32
    %13 = vector.broadcast %cst_4 : f32 to vector<8x32xf32>
    %14 = vector.broadcast %cst_5 : f32 to vector<8x32xf32>
    %15 = arith.select %12, %13, %14 : vector<8x32xi1>, vector<8x32xf32>
    %16 = arith.mulf %5, %15 : vector<8x32xf32>
    %cst_6 = arith.constant dense<0.000000e+00> : vector<8xf32>
    %17 = vector.multi_reduction <add>, %16, %cst_6 [1] : vector<8x32xf32> to vector<8xf32>
    %18 = vector.shape_cast %17 : vector<8xf32> to vector<8x1xf32>
    %19 = arith.subf %9, %18 : vector<8x1xf32>
    %c8_i32 = arith.constant 8 : i32
    %20 = arith.muli %arg0, %c8_i32 : i32
    %21 = tpu.iota {dimensions = array<i32: 0>} : vector<8x1xi32>
    %22 = vector.broadcast %20 : i32 to vector<8x1xi32>
    %23 = arith.addi %22, %21 : vector<8x1xi32>
    %c20_i32 = arith.constant 20 : i32
    %24 = vector.broadcast %c20_i32 : i32 to vector<8x1xi32>
    %25 = arith.cmpi slt, %23, %24 : vector<8x1xi32>
    %cst_7 = arith.constant 0.000000e+00 : f32
    %26 = vector.broadcast %cst_7 : f32 to vector<8x1xf32>
    %27 = arith.select %25, %19, %26 : vector<8x1xi1>, vector<8x1xf32>
    %28 = vector.shape_cast %27 : vector<8x1xf32> to vector<1x8x1xf32>
    %cst_8 = arith.constant dense<0.000000e+00> : vector<1xf32>
    %29 = vector.multi_reduction <add>, %28, %cst_8 [1, 2] : vector<1x8x1xf32> to vector<1xf32>
    %30 = vector.shape_cast %29 : vector<1xf32> to vector<1x1x1xf32>
    %31 = vector.extract %30[0, 0, 0] : f32 from vector<1x1x1xf32>
    %cst_9 = arith.constant 5.000000e-02 : f32
    %32 = arith.mulf %31, %cst_9 : f32
    %33 = vector.broadcast %32 : f32 to vector<1x8x128xf32>
    %c0_10 = arith.constant 0 : index
    %c0_11 = arith.constant 0 : index
    %c0_12 = arith.constant 0 : index
    %34 = vector.load %arg3[%c0_10, %c0_11, %c0_12] : memref<1x8x128xf32, #tpu.memory_space<vmem>>, vector<1x8x128xf32>
    tpu.vector_store %arg3[%c0_10, %c0_11, %c0_12], %33 {strides = array<i32>} : memref<1x8x128xf32, #tpu.memory_space<vmem>>, vector<1x8x128xf32>,
    return
  }
  func.func @transform_0(%arg0: i32) -> (i32, i32) {
    %c0_i32 = arith.constant 0 : i32
    %c0_i32_0 = arith.constant 0 : i32
    return %arg0, %c0_i32 : i32, i32
  }
  func.func @transform_1(%arg0: i32) -> (i32, i32) {
    %c0_i32 = arith.constant 0 : i32
    %c0_i32_0 = arith.constant 0 : i32
    return %arg0, %c0_i32 : i32, i32
  }
  func.func @transform_2(%arg0: i32) -> (i32, i32, i32) {
    %c0_i32 = arith.constant 0 : i32
    %c0_i32_0 = arith.constant 0 : i32
    %c0_i32_1 = arith.constant 0 : i32
    return %arg0, %c0_i32, %c0_i32_0 : i32, i32, i32
  }
}

</mosaic_0001>

<bundles_post_ra>
// kernel: tpu_custom_call.1
= control target key start
LH: loop header
LB: loop body
LE: loop exit
PB: predicated region body
PF: predicated region fallthrough
CT: control target
= control target key end

     0   :  { %7 = vsyncpa [#allocation3], 0  ;;  %s537_s0 = inlined_call_operand.vmem [shape: f32[20,32], index: 0, kind: input, shape index: {}]   ;;  %s538_s1 = inlined_call_operand.vmem [shape: s32[20,1], index: 1, kind: input, shape index: {}]   ;;  %s539_s2 = inlined_call_operand.hbm [shape: f32[3,8,128], index: 2, kind: output, shape index: {}]  }
   0x1   :  { %9 = vsyncpa [#allocation3 + $0x1], 0  ;;  %s430_s9 = smov 0   ;;  %s432_s10 = smov 0  }
   0x2   :  { %s434_s11 = smov 0   ;;  %s436_s12 = smov 0  }
   0x3 LB: > { %s451_s13 = sadd.s32 4294967295, %s410_s12   ;;  %s288_s14 = sadd.s32 4294967294, %s410_s12   ;;  %s410_s12 = sphi %s436_s12, %s545_s12   ;;  %s406_s11 = sphi %s434_s11, %s544_s11   ;;  %s402_s10 = sphi %s432_s10, %s543_s10   ;;  %s398_s9 = sphi %s430_s9, %s542_s9  }
   0x4   : > { %s455_s15 = sadd.s32 1, %s410_s12   ;;  %s74_s16 = sadd.s32 1, %s406_s11 }
   0x5   : > { %s71_s17 = ssub.s32 %s410_s12, %s455_s15  ;;  %p84_p0 = scmp.ne.s32.totalorder %s406_s11, %s402_s10 }
   0x6   : > { %p72_p1 = scmp.eq.s32.totalorder %s71_s17, 0  ;;  %p85_p2 = scmp.eq.s32.totalorder %s451_s13, 2 }
   0x7   : > { %p90_p3 = scmp.ne.s32.totalorder %s402_s10, %s398_s9  ;;  %p91_p4 = scmp.eq.s32.totalorder %s288_s14, 2 }
   0x8   : > { %s466_s18 = scalar_select %p72_p1, %s406_s11, %s74_s16  }
   0x9   : > { %p468_p5 = por %p85_p2, %p84_p0  ;;  %p472_p6 = por %p91_p4, %p90_p3 }
   0xa   : > { %p291_p7 = scmp.ge.s32.totalorder %s410_s12, 1  ;;  %p123_p8 = scmp.lt.s32.totalorder %s410_s12, 4 }
   0xc   : > { %p124_p9 = pnand %p291_p7, %p123_p8 }
   0xd   : > { %p148_p10 = scmp.lt.s32.totalorder (!%p124_p9), %s451_s13, 2  ;;  %v412_v0 = vmov (!%p124_p9), 0   ;;  %vm158_vm0 = vcmask (!%p124_p9), 261120   ;;  %v170_v6 = vlaneseq (!%p124_p9)  ;;  %v413_v10 = vmov (!%p124_p9), 0.003125   ;;  %s295_s29 = sshll.u32 (!%p124_p9), %s451_s13, 3 }
   0xe   : > { %127 = sbr.rel (%p124_p9) target bundleno = 565 (0x235), region = 28  ;;  %343 = vset.pattern.permute.xlu0 (!%p124_p9), %v412_v0  ;;  %v185_v18 = vstv (!%p124_p9), %s295_s29  ;;  %vm189_vm3 = vcmask (!%p124_p9), 7168   ;;  %s145_s30 = sand.u32 (!%p124_p9), 1, %s402_s10  }
   0xf   : > { %v171_v8 = vand.u32 (!%p124_p9), 127, %v170_v6  ;;  %v184_v17 = vshrl.u32 (!%p124_p9), %v170_v6, 7  ;;  %s292_s3 = sshll.u32 (!%p124_p9), %s145_s30, 3  ;;  %s297_s6 = sshll.u32 (!%p124_p9), %s451_s13, 7 }
  0x10   : > { %s147_s4 = scalar_lea.vmem (!%p124_p9), [#allocation2], %s292_s3  ;;  %s495_s17 = scalar_lea.hbm (!%p124_p9), %s539_s2, %s297_s6 }
  0x11   : > { %v186_v19 = vadd.s32 (!%p124_p9), %v185_v18, %v184_v17  ;;  %s217_s5 = sshll.u32 (!%p124_p9), %s147_s4, 4  ;;  %s497_s5 = int_to_ptr.vmem [resolvable:$true] %s217_s5 }
  0x13   : > { %vm187_vm2 = vcmp.lt.s32.totalorder (!%p124_p9), %v186_v19, 20 }
  0x15   : > { %s149_s21 = scalar_select %p148_p10, %s451_s13, 2 }
  0x16   : > { %s414_s13 = smov [#allocation2]  }
  0x17   : > { %s293_s22 = sshll.u32 %s149_s21, 3  ;;  %s204_s21 = scalar_lea.sflag [#allocation3], %s145_s30 }
  0x18   : > { %s151_s25 = scalar_lea.vmem %s537_s0, %s293_s22  ;;  %s155_s28 = scalar_lea.vmem %s538_s1, %s293_s22 }
  0x19   : > { %v156_v1 = vld [vmem:[%s151_s25] sm:$0xff]  ;;  %s348_s22 = scalar_lea.vmem %s497_s5, 128  ;;  %s352_s23 = sshll.u32 %s414_s13, 4  ;;  %s353_s23 = int_to_ptr.vmem [resolvable:$false] %s352_s23 }
  0x1a   : > { %v159_v2 = vsel %vm158_vm0, %v156_v1, -inf  ;;  %v157_v3 = vld [vmem:[%s155_s28] sm:$0xff]  ;;  %p349_p11 = scmp.ne.s32.totalorder %s497_s5, %s348_s22  ;;  %s354_s24 = scalar_lea.vmem %s353_s23, 256 }
  0x1b   : > { %160 = vmax.xlane.f32.xlu0 %v159_v2  ;;  %p355_p0 = scmp.lt.s32.totalorder %s497_s5, %s353_s23  ;;  %p356_p1 = scmp.lt.s32.totalorder %s354_s24, %s348_s22 }
  0x1c   : > { %p350_p12 = pnand %p349_p11, %p468_p5 }
  0x1d   : > { %p357_p2 = por %p356_p1, %p355_p0 }
  0x1e   : > { %p351_p13 = pneg %p350_p12 }
  0x20   : > { %p358_p3 = pnand %p357_p2, %p351_p13 }
  0x31   : > { %173 = vperm.xlu0 %343, %v157_v3  }
  0xa8   : > { %v161_v4 = vpop.xlane.xlu0 %160 }
  0xa9   : > { %v162_v5 = vsub.f32 %v156_v1, %v161_v4 }
  0xab   : > { %v163_v7 = vmul.f32 1.442695, %v162_v5 }
  0xad   : > { %344 = vpow2.f32 %v163_v7 }
  0xb0   : > { %v174_v9 = vpop.permute.xlu0 %173 }
  0xb1   : > { %vm175_vm1 = vcmp.eq.s32.totalorder %v171_v8, %v174_v9 }
  0xb2   : > { %v176_v11 = vsel %vm175_vm1, 0.903125, %v413_v10 }
  0xb3   : > { %v177_v14 = vmul.f32 %v176_v11, %v162_v5 }
  0xb5   : > { %v178_v15 = vsel %vm158_vm0, %v177_v14, 0.0 }
  0xb7   : > { %v345_v12 = vpop.eup %344 }
  0xb8   : > { %v165_v13 = vsel %vm158_vm0, %v345_v12, 0.0 }
  0xb9   : > { %166 = vadd.xlane.f32.xlu1 %v165_v13 }
  0xbd   : > { %179 = vadd.xlane.f32.xlu1 %v178_v15 }
 0x146   : > { %v167_v16 = vpop.xlane.xlu1 %166 }
 0x147   : > { %346 = vlog2.f32 %v167_v16 }
 0x14a   : > { %v180_v22 = vpop.xlane.xlu1 %179 }
 0x151   : > { %v347_v20 = vpop.eup %346 }
 0x152   : > { %v169_v21 = vmul.f32 0.6931472, %v347_v20 }
 0x154   : > { %v181_v23 = vsub.f32 %v169_v21, %v180_v22 }
 0x156   : > { %v188_v24 = vsel %vm187_vm2, %v181_v23, 0.0 }
 0x157   : > { %v190_v25 = vsel %vm189_vm3, %v188_v24, 0.0 }
 0x158   : > { %191 = vadd.xlane.f32.xlu1 %v190_v25 }
 0x1e5   : > { %v192_v26 = vpop.xlane.xlu1 %191 }
 0x1e6   : > { %v193_v27 = vrot.slane %v192_v26, 4 }
 0x1e8   : > { %v194_v28 = vadd.f32 %v193_v27, %v192_v26 }
 0x1ea   : > { %v195_v29 = vrot.slane %v194_v28, 2 }
 0x1ec   : > { %v196_v30 = vadd.f32 %v195_v29, %v194_v28 }
 0x1ee   : > { %v197_v31 = vrot.slane %v196_v30, 1 }
 0x1f0   : > { %v198_v32 = vadd.f32 %v197_v31, %v196_v30 }
 0x1f2   : > { %300 = vpush %v198_v32 }
 0x223   : > { %s301_s7 = spop %300 }
 0x224   : > { %s200_s8 = smul.f32 0.05, %s301_s7 }
 0x226   : > { %v201_v33 = vstv %s200_s8 }
 0x227   : > { %202 = vst [vmem:[%s147_s4] sm:$0xff] %v201_v33 }
 0x228   : > { %361 = shalt.err (!%p358_p3)
}
 0x229   : > { %s362_s25 = scalar_lea.hbm %s495_s17, 128  ;;  %s366_s28 = scalar_lea.hbm %s539_s2, 384 }
 0x22a   : > { %p363_p4 = scmp.ne.s32.totalorder %s495_s17, %s362_s25  ;;  %p367_p9 = scmp.lt.u32.totalorder %s495_s17, %s539_s2 }
 0x22b   : > { %p368_p10 = scmp.lt.u32.totalorder %s366_s28, %s362_s25  ;;  %p370_p12 = scmp.lt.u32.totalorder %s362_s25, %s495_s17 }
 0x22c   : > { %p364_p7 = pnand %p363_p4, %p468_p5 }
 0x22d   : > { %p369_p11 = por %p368_p10, %p367_p9 }
 0x22e   : > { %p365_p8 = pneg %p364_p7 }
 0x22f   : > { %p371_p13 = por %p370_p12, %p369_p11 }
 0x231   : > { %p372_p0 = pnand %p371_p13, %p365_p8 }
 0x233   : > { %375 = shalt.err (!%p372_p0)
}
 0x234   : > { %302 = dma.vmem_to_hbm [thread:$0]  (%p468_p5), %s497_s5, 128, %s495_s17, %s204_s21  }
 0x235 PF: > { %p308_p1 = scmp.ge.s32.totalorder %s410_s12, 2  ;;  %s229_s3 = sand.u32 1, %s398_s9  }
 0x236   : > { %s230_s4 = scalar_lea.sflag [#allocation3], %s229_s3 }
 0x237   : > { %p305_p2 = pnand %p308_p1, %p472_p6 }
 0x239   : > { %393 = dma.done.wait (!%p305_p2), %s230_s4, 128  }
 0x23a   : > { %395 = vsyncadd (!%p305_p2), %s230_s4, 4294967168  ;;  %p12_p3 = scmp.ge.s32.totalorder %s455_s15, 5   ;;  %s542_s9 = smov %s402_s10 }
 0x23b   : > { %s543_s10 = smov %s406_s11  ;;  %s544_s11 = smov %s466_s18 }
 0x23c   : > { %s545_s12 = smov %s455_s15  ;;  %14 = sbr.rel (!%p12_p3) target bundleno = 3 (0x3), region = 66 }
 0x243   :  { %235 = vsyncpa [#allocation3], 1 }
 0x244   :  { %237 = vsyncpa [#allocation3 + $0x1], 1 }

</bundles_post_ra>
